<compile_context>
chip_gen: v6e
topology: v6e:2x2x1
jax: 0.10.0
libtpu: 0.0.40
codegen_flags: <defaults>
</compile_context>

<pallas_src>
import jax
import jax.numpy as jnp
from jax.experimental import pallas as pl
from jax.experimental.pallas import tpu as pltpu

EPS = 1e-6


def pointnorm_kernel(points_ref, alpha_ref, beta_ref, out_ref):
    # points_ref: (C, K, Nt) VMEM    alpha_ref / beta_ref: (C,) SMEM
    # out_ref:    (C + 3, K, Nt) VMEM
    pts = points_ref[...]                                  # (C, K, Nt)
    C = pts.shape[0]

    # anchor = first sample of each group (index 0 along K, the sublane dim).
    anchor = pts[:, 0:1, :]                                # (C, 1, Nt)
    y = pts - anchor                                       # (C, K, Nt)

    # Population std over the channel dim (torch unbiased=False).  The channel
    # reduction is a cheap cross-vreg elementwise sum (C is tiny).
    mu = jnp.mean(y, axis=0, keepdims=True)                # (1, K, Nt)
    var = jnp.mean((y - mu) * (y - mu), axis=0, keepdims=True)
    std = jnp.sqrt(var)                                    # (1, K, Nt)

    # One reciprocal on the std tile instead of C per-element divides.
    # (approx=True would push it to the EUP, but exact keeps tight parity with
    #  the reference divide; this kernel is HBM-bound either way.)
    inv = pl.reciprocal(std + EPS, approx=False)[0]        # (K, Nt)

    # xyz passthrough.
    out_ref[0:3, :, :] = pts[0:3, :, :]

    # Per-channel affine with SMEM scalars (static unroll; C is small).
    for c in range(C):
        a_c = alpha_ref[c]
        b_c = beta_ref[c]
        out_ref[3 + c, :, :] = y[c] * (inv * a_c) + b_c


def _pick_tile_n(n, target):
    """Largest multiple of 128 that divides n and is <= target; else full n."""
    if n <= target or n % 128 != 0:
        return n
    t = max((target // 128) * 128, 128)
    while n % t != 0:
        t -= 128
    return t


def point_norm(points, alpha, beta, *, tile_n_target=2048):
    """points: (B, C, N, K) f32; alpha/beta: (C, 1, 1) f32 -> (B, C+3, N, K) f32."""
    B, C, N, K = points.shape
    assert C >= 3, "PointNorm xyz passthrough requires at least 3 channels"

    # Lane-dense layout: put the large N dim last (lanes), keep small K on sublanes.
    pts_t = jnp.transpose(points, (0, 1, 3, 2))            # (B, C, K, N)
    alpha_f = jnp.reshape(alpha, (C,)).astype(points.dtype)
    beta_f = jnp.reshape(beta, (C,)).astype(points.dtype)

    tile_n = _pick_tile_n(N, tile_n_target)
    grid = (B, N // tile_n)

    out_t = pl.pallas_call(
        pointnorm_kernel,
        out_shape=jax.ShapeDtypeStruct((B, C + 3, K, N), points.dtype),
        grid=grid,
        in_specs=[
            pl.BlockSpec((None, C, K, tile_n), lambda b, n: (b, 0, 0, n)),
            pl.BlockSpec(memory_space=pltpu.MemorySpace.SMEM),   # alpha (C,)
            pl.BlockSpec(memory_space=pltpu.MemorySpace.SMEM),   # beta  (C,)
        ],
        out_specs=pl.BlockSpec((None, C + 3, K, tile_n), lambda b, n: (b, 0, 0, n)),
        compiler_params=pltpu.CompilerParams(
            dimension_semantics=("parallel", "parallel"),
        ),
    )(pts_t, alpha_f, beta_f)

    return jnp.transpose(out_t, (0, 1, 3, 2))              # back to (B, C+3, N, K)


def point_norm_ref(points, alpha, beta):
    """Pure-JAX reference mirroring the PyTorch forward (unbiased=False std)."""
    xyz = points[:, :3, :, :]
    anchor = points[:, :, :, 0:1]
    y = points - anchor
    std = jnp.std(y, axis=1, keepdims=True)                # population std
    p = y / (std + EPS)
    p = p * alpha[None, :, :, :] + beta[None, :, :, :]
    return jnp.concatenate([xyz, p], axis=1)


if __name__ == "__main__":
    B, C, N, K = 2, 4, 256, 8

    key = jax.random.PRNGKey(0)
    points = jax.random.normal(key, (B, C, N, K), dtype=jnp.float32)

    # Parameters init matching nn.Parameter(torch.ones/zeros(1, C, 1, 1)).
    alpha = jnp.ones((C, 1, 1), dtype=jnp.float32)
    beta = jnp.zeros((C, 1, 1), dtype=jnp.float32)

    ref = point_norm_ref(points, alpha, beta)

    # Default (single N tile per batch element at this small size).
    out = jax.block_until_ready(point_norm(points, alpha, beta))
    assert out.shape == (B, C + 3, N, K), out.shape
    assert jnp.allclose(out, ref, atol=1e-5, rtol=1e-5), "mismatch vs reference"

    # Exercise the multi-tile pipelined path (grid = (B, N // 128)).
    out_tiled = jax.block_until_ready(point_norm(points, alpha, beta, tile_n_target=128))
    assert jnp.allclose(out_tiled, ref, atol=1e-5, rtol=1e-5), "tiled mismatch vs reference"

    # Nontrivial affine to validate the SMEM alpha/beta path.
    ka, kb = jax.random.split(jax.random.PRNGKey(1))
    alpha2 = jax.random.normal(ka, (C, 1, 1), dtype=jnp.float32)
    beta2 = jax.random.normal(kb, (C, 1, 1), dtype=jnp.float32)
    ref2 = point_norm_ref(points, alpha2, beta2)
    out2 = jax.block_until_ready(point_norm(points, alpha2, beta2))
    assert jnp.allclose(out2, ref2, atol=1e-5, rtol=1e-5), "affine mismatch vs reference"

    print("KERNEL_OK")
</pallas_src>

<mosaic_0001>
module attributes {stable_mosaic.version = 11 : i64} {
  func.func @pointnorm_kernel(%arg0: i32, %arg1: i32, %arg2: memref<1x4x8x256xf32, #tpu.memory_space<vmem>>, %arg3: memref<4xf32, #tpu.memory_space<smem>>, %arg4: memref<4xf32, #tpu.memory_space<smem>>, %arg5: memref<1x7x8x256xf32, #tpu.memory_space<vmem>>) attributes {dimension_semantics = [#tpu.dimension_semantics<parallel>, #tpu.dimension_semantics<parallel>], iteration_bounds = array<i64: 2, 1>, scalar_prefetch = 0 : i64, scratch_operands = 0 : i64, tpu.core_type = #tpu.core_type<tc>, window_params = [{transform_indices = @transform_0, window_bounds = array<i64: 1, 4, 8, 256>}, {transform_indices = @transform_1, window_bounds = array<i64: 4>}, {transform_indices = @transform_2, window_bounds = array<i64: 4>}, {transform_indices = @transform_3, window_bounds = array<i64: 1, 7, 8, 256>}]} {
    %c0 = arith.constant 0 : index
    %c0_0 = arith.constant 0 : index
    %c0_1 = arith.constant 0 : index
    %c0_2 = arith.constant 0 : index
    %0 = vector.load %arg2[%c0, %c0_0, %c0_1, %c0_2] : memref<1x4x8x256xf32, #tpu.memory_space<vmem>>, vector<1x4x8x256xf32>
    %1 = vector.shape_cast %0 : vector<1x4x8x256xf32> to vector<4x8x256xf32>
    %2 = vector.extract_strided_slice %1 {offsets = [0, 0, 0], sizes = [4, 1, 256], strides = [1, 1, 1]} : vector<4x8x256xf32> to vector<4x1x256xf32>
    %3 = vector.broadcast %2 : vector<4x1x256xf32> to vector<4x8x256xf32>
    %4 = arith.subf %1, %3 : vector<4x8x256xf32>
    %cst = arith.constant dense<0.000000e+00> : vector<8x256xf32>
    %5 = vector.multi_reduction <add>, %4, %cst [0] : vector<4x8x256xf32> to vector<8x256xf32>
    %6 = vector.shape_cast %5 : vector<8x256xf32> to vector<1x8x256xf32>
    %cst_3 = arith.constant 4.000000e+00 : f32
    %7 = vector.broadcast %cst_3 : f32 to vector<1x8x256xf32>
    %8 = arith.divf %6, %7 : vector<1x8x256xf32>
    %9 = vector.broadcast %8 : vector<1x8x256xf32> to vector<4x8x256xf32>
    %10 = arith.subf %4, %9 : vector<4x8x256xf32>
    %11 = vector.broadcast %8 : vector<1x8x256xf32> to vector<4x8x256xf32>
    %12 = arith.subf %4, %11 : vector<4x8x256xf32>
    %13 = arith.mulf %10, %12 : vector<4x8x256xf32>
    %cst_4 = arith.constant dense<0.000000e+00> : vector<8x256xf32>
    %14 = vector.multi_reduction <add>, %13, %cst_4 [0] : vector<4x8x256xf32> to vector<8x256xf32>
    %15 = vector.shape_cast %14 : vector<8x256xf32> to vector<1x8x256xf32>
    %cst_5 = arith.constant 4.000000e+00 : f32
    %16 = vector.broadcast %cst_5 : f32 to vector<1x8x256xf32>
    %17 = arith.divf %15, %16 : vector<1x8x256xf32>
    %18 = math.sqrt %17 : vector<1x8x256xf32>
    %cst_6 = arith.constant 9.99999997E-7 : f32
    %19 = vector.broadcast %cst_6 : f32 to vector<1x8x256xf32>
    %20 = arith.addf %18, %19 : vector<1x8x256xf32>
    %21 = tpu.reciprocal %20 : vector<1x8x256xf32> -> vector<1x8x256xf32>
    %22 = vector.shape_cast %21 : vector<1x8x256xf32> to vector<8x256xf32>
    %23 = vector.extract_strided_slice %1 {offsets = [0, 0, 0], sizes = [3, 8, 256], strides = [1, 1, 1]} : vector<4x8x256xf32> to vector<3x8x256xf32>
    %c0_7 = arith.constant 0 : index
    %c0_8 = arith.constant 0 : index
    %c0_9 = arith.constant 0 : index
    %c0_10 = arith.constant 0 : index
    %24 = vector.load %arg5[%c0_7, %c0_8, %c0_9, %c0_10] : memref<1x7x8x256xf32, #tpu.memory_space<vmem>>, vector<1x3x8x256xf32>
    %25 = vector.shape_cast %24 : vector<1x3x8x256xf32> to vector<3x8x256xf32>
    %26 = vector.shape_cast %23 : vector<3x8x256xf32> to vector<1x3x8x256xf32>
    tpu.vector_store %arg5[%c0_7, %c0_8, %c0_9, %c0_10], %26 {strides = array<i32>} : memref<1x7x8x256xf32, #tpu.memory_space<vmem>>, vector<1x3x8x256xf32>,
    %c0_11 = arith.constant 0 : index
    %27 = memref.load %arg3[%c0_11] : memref<4xf32, #tpu.memory_space<smem>>
    %c0_12 = arith.constant 0 : index
    %28 = memref.load %arg4[%c0_12] : memref<4xf32, #tpu.memory_space<smem>>
    %29 = vector.extract_strided_slice %4 {offsets = [0, 0, 0], sizes = [1, 8, 256], strides = [1, 1, 1]} : vector<4x8x256xf32> to vector<1x8x256xf32>
    %30 = vector.shape_cast %29 : vector<1x8x256xf32> to vector<8x256xf32>
    %31 = vector.broadcast %27 : f32 to vector<8x256xf32>
    %32 = arith.mulf %22, %31 : vector<8x256xf32>
    %33 = arith.mulf %30, %32 : vector<8x256xf32>
    %34 = vector.broadcast %28 : f32 to vector<8x256xf32>
    %35 = arith.addf %33, %34 : vector<8x256xf32>
    %c0_13 = arith.constant 0 : index
    %c3 = arith.constant 3 : index
    %c0_14 = arith.constant 0 : index
    %c0_15 = arith.constant 0 : index
    %36 = vector.load %arg5[%c0_13, %c3, %c0_14, %c0_15] : memref<1x7x8x256xf32, #tpu.memory_space<vmem>>, vector<1x1x8x256xf32>
    %37 = vector.shape_cast %36 : vector<1x1x8x256xf32> to vector<8x256xf32>
    %38 = vector.shape_cast %35 : vector<8x256xf32> to vector<1x1x8x256xf32>
    tpu.vector_store %arg5[%c0_13, %c3, %c0_14, %c0_15], %38 {strides = array<i32>} : memref<1x7x8x256xf32, #tpu.memory_space<vmem>>, vector<1x1x8x256xf32>,
    %c1 = arith.constant 1 : index
    %39 = memref.load %arg3[%c1] : memref<4xf32, #tpu.memory_space<smem>>
    %c1_16 = arith.constant 1 : index
    %40 = memref.load %arg4[%c1_16] : memref<4xf32, #tpu.memory_space<smem>>
    %41 = vector.extract_strided_slice %4 {offsets = [1, 0, 0], sizes = [1, 8, 256], strides = [1, 1, 1]} : vector<4x8x256xf32> to vector<1x8x256xf32>
    %42 = vector.shape_cast %41 : vector<1x8x256xf32> to vector<8x256xf32>
    %43 = vector.broadcast %39 : f32 to vector<8x256xf32>
    %44 = arith.mulf %22, %43 : vector<8x256xf32>
    %45 = arith.mulf %42, %44 : vector<8x256xf32>
    %46 = vector.broadcast %40 : f32 to vector<8x256xf32>
    %47 = arith.addf %45, %46 : vector<8x256xf32>
    %c0_17 = arith.constant 0 : index
    %c4 = arith.constant 4 : index
    %c0_18 = arith.constant 0 : index
    %c0_19 = arith.constant 0 : index
    %48 = vector.load %arg5[%c0_17, %c4, %c0_18, %c0_19] : memref<1x7x8x256xf32, #tpu.memory_space<vmem>>, vector<1x1x8x256xf32>
    %49 = vector.shape_cast %48 : vector<1x1x8x256xf32> to vector<8x256xf32>
    %50 = vector.shape_cast %47 : vector<8x256xf32> to vector<1x1x8x256xf32>
    tpu.vector_store %arg5[%c0_17, %c4, %c0_18, %c0_19], %50 {strides = array<i32>} : memref<1x7x8x256xf32, #tpu.memory_space<vmem>>, vector<1x1x8x256xf32>,
    %c2 = arith.constant 2 : index
    %51 = memref.load %arg3[%c2] : memref<4xf32, #tpu.memory_space<smem>>
    %c2_20 = arith.constant 2 : index
    %52 = memref.load %arg4[%c2_20] : memref<4xf32, #tpu.memory_space<smem>>
    %53 = vector.extract_strided_slice %4 {offsets = [2, 0, 0], sizes = [1, 8, 256], strides = [1, 1, 1]} : vector<4x8x256xf32> to vector<1x8x256xf32>
    %54 = vector.shape_cast %53 : vector<1x8x256xf32> to vector<8x256xf32>
    %55 = vector.broadcast %51 : f32 to vector<8x256xf32>
    %56 = arith.mulf %22, %55 : vector<8x256xf32>
    %57 = arith.mulf %54, %56 : vector<8x256xf32>
    %58 = vector.broadcast %52 : f32 to vector<8x256xf32>
    %59 = arith.addf %57, %58 : vector<8x256xf32>
    %c0_21 = arith.constant 0 : index
    %c5 = arith.constant 5 : index
    %c0_22 = arith.constant 0 : index
    %c0_23 = arith.constant 0 : index
    %60 = vector.load %arg5[%c0_21, %c5, %c0_22, %c0_23] : memref<1x7x8x256xf32, #tpu.memory_space<vmem>>, vector<1x1x8x256xf32>
    %61 = vector.shape_cast %60 : vector<1x1x8x256xf32> to vector<8x256xf32>
    %62 = vector.shape_cast %59 : vector<8x256xf32> to vector<1x1x8x256xf32>
    tpu.vector_store %arg5[%c0_21, %c5, %c0_22, %c0_23], %62 {strides = array<i32>} : memref<1x7x8x256xf32, #tpu.memory_space<vmem>>, vector<1x1x8x256xf32>,
    %c3_24 = arith.constant 3 : index
    %63 = memref.load %arg3[%c3_24] : memref<4xf32, #tpu.memory_space<smem>>
    %c3_25 = arith.constant 3 : index
    %64 = memref.load %arg4[%c3_25] : memref<4xf32, #tpu.memory_space<smem>>
    %65 = vector.extract_strided_slice %4 {offsets = [3, 0, 0], sizes = [1, 8, 256], strides = [1, 1, 1]} : vector<4x8x256xf32> to vector<1x8x256xf32>
    %66 = vector.shape_cast %65 : vector<1x8x256xf32> to vector<8x256xf32>
    %67 = vector.broadcast %63 : f32 to vector<8x256xf32>
    %68 = arith.mulf %22, %67 : vector<8x256xf32>
    %69 = arith.mulf %66, %68 : vector<8x256xf32>
    %70 = vector.broadcast %64 : f32 to vector<8x256xf32>
    %71 = arith.addf %69, %70 : vector<8x256xf32>
    %c0_26 = arith.constant 0 : index
    %c6 = arith.constant 6 : index
    %c0_27 = arith.constant 0 : index
    %c0_28 = arith.constant 0 : index
    %72 = vector.load %arg5[%c0_26, %c6, %c0_27, %c0_28] : memref<1x7x8x256xf32, #tpu.memory_space<vmem>>, vector<1x1x8x256xf32>
    %73 = vector.shape_cast %72 : vector<1x1x8x256xf32> to vector<8x256xf32>
    %74 = vector.shape_cast %71 : vector<8x256xf32> to vector<1x1x8x256xf32>
    tpu.vector_store %arg5[%c0_26, %c6, %c0_27, %c0_28], %74 {strides = array<i32>} : memref<1x7x8x256xf32, #tpu.memory_space<vmem>>, vector<1x1x8x256xf32>,
    return
  }
  func.func @transform_0(%arg0: i32, %arg1: i32) -> (i32, i32, i32, i32) {
    %c0_i32 = arith.constant 0 : i32
    %c0_i32_0 = arith.constant 0 : i32
    %c0_i32_1 = arith.constant 0 : i32
    return %arg0, %c0_i32, %c0_i32_0, %arg1 : i32, i32, i32, i32
  }
  func.func @transform_1(%arg0: i32, %arg1: i32) -> i32 {
    %c0_i32 = arith.constant 0 : i32
    %c0_i32_0 = arith.constant 0 : i32
    return %c0_i32 : i32
  }
  func.func @transform_2(%arg0: i32, %arg1: i32) -> i32 {
    %c0_i32 = arith.constant 0 : i32
    %c0_i32_0 = arith.constant 0 : i32
    return %c0_i32 : i32
  }
  func.func @transform_3(%arg0: i32, %arg1: i32) -> (i32, i32, i32, i32) {
    %c0_i32 = arith.constant 0 : i32
    %c0_i32_0 = arith.constant 0 : i32
    %c0_i32_1 = arith.constant 0 : i32
    return %arg0, %c0_i32, %c0_i32_0, %arg1 : i32, i32, i32, i32
  }
}

</mosaic_0001>

<bundles_post_ra>
// kernel: tpu_custom_call.1
= control target key start
LH: loop header
LB: loop body
LE: loop exit
PB: predicated region body
PF: predicated region fallthrough
CT: control target
= control target key end

     0   :  { %s1078_s0 = inlined_call_operand.hbm [shape: f32[2,4,8,256], index: 0, kind: input, shape index: {}]   ;;  %s1079_s1 = inlined_call_operand.vmem [shape: f32[4], index: 1, kind: input, shape index: {}]   ;;  %s1080_s2 = inlined_call_operand.vmem [shape: f32[4], index: 2, kind: input, shape index: {}]   ;;  %s1081_s3 = inlined_call_operand.hbm [shape: f32[2,7,8,256], index: 3, kind: output, shape index: {}]  }
   0x1   :  { %1088 = sst [smem:[#allocation14_spill]] %s1079_s1 }
   0x2   :  { %8 = vsyncpa [#allocation3], 0 }
   0x3   :  { %10 = vsyncpa [#allocation3 + $0x1], 0 }
   0x4   :  { %11 = vsyncpa [#allocation5], 0 }
   0x5   :  { %12 = vsyncpa [#allocation8], 0 }
   0x6   :  { %13 = vsyncpa [#allocation4], 0 }
   0x7   :  { %15 = vsyncpa [#allocation4 + $0x1], 0  ;;  %s822_s12 = smov 0   ;;  %s824_s13 = smov 0  }
   0x8   :  { %s826_s14 = smov 0   ;;  %s828_s15 = smov 0  }
   0x9   :  { %s830_s16 = smov 0   ;;  %s832_s17 = smov 0  }
   0xa LB: > { %s518_s18 = sadd.s32 4294967295, %s792_s17   ;;  %s519_s19 = sadd.s32 4294967294, %s792_s17   ;;  %s792_s17 = sphi %s832_s17, %s21_s17   ;;  %s788_s16 = sphi %s830_s16, %s1109_s16   ;;  %s784_s15 = sphi %s828_s15, %s1108_s15   ;;  %s780_s14 = sphi %s826_s14, %s1107_s14   ;;  %s776_s13 = sphi %s824_s13, %s1106_s13   ;;  %s772_s12 = sphi %s822_s12, %s1105_s12  }
   0xb   : > { %s42_s20 = sadd.s32 1, %s780_s14  ;;  %p49_p0 = scmp.ne.s32.totalorder %s780_s14, %s776_s13 }
   0xc   : > { %p50_p1 = scmp.eq.s32.totalorder %s792_s17, 0  ;;  %p55_p2 = scmp.ne.s32.totalorder %s776_s13, %s772_s12 }
   0xd   : > { %p860_p3 = scmp.eq.s32.totalorder %s518_s18, 0  ;;  %p123_p4 = scmp.eq.s32.totalorder %s518_s18, 1 }
   0xe   : > { %p864_p5 = por %p50_p1, %p49_p0  ;;  %p129_p6 = scmp.eq.s32.totalorder %s519_s19, 1 }
   0xf   : > { %s1089_s21 = scalar_select %p860_p3, 1, 0 }
  0x10   : > { %p870_p7 = por %p860_p3, %p55_p2  ;;  %p874_p8 = por %p123_p4, %p49_p0 }
  0x11   : > { %p878_p9 = por %p129_p6, %p55_p2  ;;  %p520_p10 = scmp.ge.s32.totalorder %s792_s17, 1 }
  0x12   : > { %s1091_s23 = scalar_select %p870_p7, 1, 0 }
  0x13   : > { %s1092_s24 = scalar_select %p874_p8, 1, 0 }
  0x14   : > { %s1093_s25 = scalar_select %p878_p9, 1, 0 }
  0x15   : > { %p136_p11 = scmp.lt.s32.totalorder %s792_s17, 3  ;;  %s1094_s1 = sld [smem:[#allocation14_spill]] }
  0x16   : > { %p580_p0 = scmp.lt.s32.totalorder %s792_s17, 2  ;;  %s160_s5 = sshll.u32 %s1080_s2, 4  ;;  %s161_s5 = int_to_ptr.vmem [resolvable:$true] %s160_s5 }
  0x17   : > { %p887_p12 = pnand %p520_p10, %p136_p11 }
  0x18   : > { %p900_p2 = pnand %p580_p0, %p864_p5 }
  0x19   : > { %s1095_s29 = scalar_select %p887_p12, 1, 0 }
  0x1a   : > { %p563_p1 = pneg %p887_p12 }
  0x1b   : > { %s149_s28 = sshll.u32 %s1094_s1, 4  ;;  %s150_s28 = int_to_ptr.vmem [resolvable:$true] %s149_s28 }
  0x1c   : > { %s1096_s6 = scalar_select %p900_p2, 1, 0 }
  0x1d   : > { %p906_p4 = pnand %p563_p1, %p860_p3  ;;  %s646_s8 = scalar_lea.vmem %s150_s28, 16 }
  0x1e   : > { %p647_p6 = scmp.ne.s32.totalorder %s150_s28, %s646_s8  ;;  %p654_p9 = scmp.lt.s32.totalorder %s150_s28, %s150_s28 }
  0x1f   : > { %p648_p10 = pneg %p906_p4  ;;  %p655_p8 = scmp.lt.s32.totalorder %s646_s8, %s646_s8 }
  0x21   : > { %p649_p11 = pnand %p648_p10, %p647_p6  ;;  %p656_p7 = por %p655_p8, %p654_p9 }
  0x23   : > { %p650_p13 = pneg %p649_p11 }
  0x25   : > { %p657_p5 = pnand %p656_p7, %p650_p13 }
  0x27   : > { %660 = shalt.err (!%p657_p5)
}
  0x28   : > { %s794_s9 = smov [#allocation6]   ;;  %s661_s10 = scalar_lea.vmem %s161_s5, 16 }
  0x29   : > { %566 = dma.vmem_to_smem (!%p906_p4), %s150_s28, 16, %s794_s9, [#allocation5]  }
  0x2a   : > { %p662_p0 = scmp.ne.s32.totalorder %s161_s5, %s661_s10  ;;  %p669_p12 = scmp.lt.s32.totalorder %s161_s5, %s161_s5 }
  0x2b   : > { %p670_p2 = scmp.lt.s32.totalorder %s661_s10, %s661_s10 }
  0x2c   : > { %p664_p1 = pnand %p662_p0, %p648_p10 }
  0x2d   : > { %p671_p6 = por %p670_p2, %p669_p12 }
  0x2e   : > { %p665_p3 = pneg %p664_p1 }
  0x30   : > { %p672_p11 = pnand %p671_p6, %p665_p3 }
  0x32   : > { %675 = shalt.err (!%p672_p11)
}
  0x33   : > { %s795_s11 = smov [#allocation7]   ;;  %s33_s18 = sadd.s32 1, %s788_s16 }
  0x34   : > { %569 = dma.vmem_to_smem (!%p906_p4), %s161_s5, 16, %s795_s11, [#allocation8]  }
  0x35   : > { %s171_s19 = sand.u32 1, %s780_s14   ;;  %p35_p7 = scmp.ge.s32.totalorder %s33_s18, 2 }
  0x36   : > { %s524_s22 = sshll.u32 %s171_s19, 6  ;;  %s548_s26 = sshll.u32 %s788_s16, 10 }
  0x37   : > { %s1111_s18 = smov (%p35_p7, %s33_s18), 0  ;;  %s183_s30 = scalar_lea.hbm %s1078_s0, %s548_s26 }
  0x38   : > { %s37_s4 = ssub.s32 %s788_s16, %s1111_s18  ;;  %s175_s7 = scalar_lea.vmem [#allocation2], %s524_s22 }
  0x39   : > { %s184_s8 = sshll.u32 %s175_s7, 4  ;;  %p40_p3 = scmp.eq.s32.totalorder %s37_s4, 0  ;;  %s185_s8 = int_to_ptr.vmem [resolvable:$true] %s184_s8 }
  0x3a   : > { %s172_s5 = scalar_lea.sflag [#allocation3], %s171_s19  ;;  %p1098_p8 = scmp.ne.s32.totalorder %s1096_s6, 0 }
  0x3b   : > { %s929_s9 = scalar_select %p40_p3, %s780_s14, %s42_s20  }
  0x3c   : > { %p678_p9 = pneg %p1098_p8  ;;  %s689_s10 = scalar_lea.vmem %s185_s8, 1024 }
  0x3d   : > { %p690_p12 = scmp.ne.s32.totalorder %s185_s8, %s689_s10  ;;  %s796_s11 = smov [#allocation2]  }
  0x3e   : > { %s694_s1 = sshll.u32 %s796_s11, 4  ;;  %s695_s1 = int_to_ptr.vmem [resolvable:$false] %s694_s1 }
  0x3f   : > { %p692_p13 = pnand %p690_p12, %p678_p9  ;;  %s696_s27 = scalar_lea.vmem %s695_s1, 2048 }
  0x40   : > { %p697_p4 = scmp.lt.s32.totalorder %s185_s8, %s695_s1  ;;  %p698_p10 = scmp.lt.s32.totalorder %s696_s27, %s689_s10 }
  0x41   : > { %p693_p2 = pneg %p692_p13 }
  0x42   : > { %p699_p5 = por %p698_p10, %p697_p4 }
  0x44   : > { %p700_p0 = pnand %p699_p5, %p693_p2 }
  0x46   : > { %703 = shalt.err (!%p700_p0)
}
  0x47   : > { %s797_s22 = smov 256   ;;  %s798_s20 = smov 16  }
  0x48   : > { %573 = dma.hbm_to_vmem [thread:$0]  (!%p1098_p8), %s183_s30, 1024, %s185_s8, %s172_s5, %s797_s22, %s797_s22, %s798_s20  }
  0x49   : > { %p1099_p1 = scmp.ne.s32.totalorder %s1095_s29, 0 }
  0x4a   : > { %s938_s19 = sand.u32 (!%p1099_p1), 1, %s776_s13   ;;  %p1100_p6 = scmp.ne.s32.totalorder (!%p1099_p1), %s1091_s23, 0 }
  0x4b   : > { %196 = sbr.rel (%p1099_p1) target bundleno = 175 (0xaf), region = 32  ;;  %s528_s26 = sshll.u32 (!%p1099_p1), %s938_s19, 6 }
  0x4c   : > { %s199_s1 = scalar_lea.sflag (!%p1099_p1), [#allocation3], %s938_s19  ;;  %s202_s28 = scalar_lea.vmem (!%p1099_p1), [#allocation2], %s528_s26 }
  0x50   : > { %755 = dma.done.wait (%p1100_p6), %s199_s1, 1024  }
  0x51   : > { %757 = vsyncadd (%p1100_p6), %s199_s1, 4294966272  ;;  %p1101_p11 = scmp.ne.s32.totalorder %s1089_s21, 0 }
  0x53   : > { %759 = dma.done.wait (%p1101_p11), [#allocation5], 16  }
  0x54   : > { %761 = vsyncadd (%p1101_p11), [#allocation5], 4294967280 }
  0x55   : > { %763 = dma.done.wait (%p1101_p11), [#allocation8], 16  }
  0x56   : > { %765 = vsyncadd (%p1101_p11), [#allocation8], 4294967280 }
  0x57   : > { %215 = sfence }
  0x58   : > { %s549_s29 = smul.u32 112, %s938_s19  ;;  %v244_v0 = vlaneseq  ;;  %v236_v1 = vld [vmem:[%s202_s28] sm:$0xff]  ;;  %v237_v2 = vld [vmem:[%s202_s28 + $0x8] sm:$0xff]  ;;  %v238_v3 = vld [vmem:[%s202_s28 + $0x10] sm:$0xff]  ;;  %s341_s21 = sld [smem:[#allocation6]] }
  0x59   : > { %v239_v5 = vld [vmem:[%s202_s28 + $0x18] sm:$0xff]  ;;  %v240_v6 = vld [vmem:[%s202_s28 + $0x20] sm:$0xff]  ;;  %v241_v7 = vld [vmem:[%s202_s28 + $0x28] sm:$0xff]  ;;  %s995_s6 = sld [smem:[#allocation7]]  ;;  %s550_s11 = smul.u32 1792, %s784_s15 }
  0x5a   : > { %v245_v4 = vshrl.u32 %v244_v0, 7  ;;  %s955_s23 = scalar_lea.vmem [#allocation9], %s549_s29  ;;  %v242_v9 = vld [vmem:[%s202_s28 + $0x30] sm:$0xff]  ;;  %v243_v10 = vld [vmem:[%s202_s28 + $0x38] sm:$0xff]  ;;  %s533_s30 = sld [smem:[#allocation6 + $0x1]] }
  0x5b   : > { %335 = vst [vmem:[%s955_s23] sm:$0xff] %v236_v1  ;;  %336 = vst [vmem:[%s955_s23 + $0x8] sm:$0xff] %v237_v2  ;;  %s997_s4 = sld [smem:[#allocation7 + $0x1]]  ;;  %s409_s27 = sshll.u32 %s955_s23, 4  ;;  %s1022_s27 = int_to_ptr.vmem [resolvable:$true] %s409_s27 }
  0x5c   : > { %337 = vst [vmem:[%s955_s23 + $0x10] sm:$0xff] %v238_v3  ;;  %338 = vst [vmem:[%s955_s23 + $0x18] sm:$0xff] %v239_v5  ;;  %v246_v8 = vsub.s32 0, %v245_v4  ;;  %s537_s7 = sld [smem:[#allocation6 + $0x2]]  ;;  %s1020_s20 = scalar_lea.hbm %s1081_s3, %s550_s11 }
  0x5d   : > { %339 = vst [vmem:[%s955_s23 + $0x20] sm:$0xff] %v240_v6  ;;  %340 = vst [vmem:[%s955_s23 + $0x28] sm:$0xff] %v241_v7  ;;  %s541_s8 = sld [smem:[#allocation6 + $0x3]]  ;;  %s394_s26 = scalar_lea.sflag [#allocation4], %s938_s19 }
  0x5e   : > { %v247_v11 = vrot.slane %v236_v1, %v246_v8  ;;  %v251_v12 = vrot.slane %v237_v2, %v246_v8  ;;  %v255_v13 = vrot.slane %v238_v3, %v246_v8  ;;  %v259_v14 = vrot.slane %v239_v5, %v246_v8  ;;  %s999_s5 = sld [smem:[#allocation7 + $0x2]]  ;;  %s704_s1 = scalar_lea.vmem %s1022_s27, 1792 }
  0x5f   : > { %v263_v15 = vrot.slane %v240_v6, %v246_v8  ;;  %v271_v16 = vrot.slane %v242_v9, %v246_v8  ;;  %v267_v17 = vrot.slane %v241_v7, %v246_v8  ;;  %v275_v18 = vrot.slane %v243_v10, %v246_v8  ;;  %s1001_s10 = sld [smem:[#allocation7 + $0x3]]  ;;  %p705_p7 = scmp.ne.s32.totalorder %s1022_s27, %s704_s1 }
  0x60   : > { %v963_v19 = vsub.f32 %v236_v1, %v247_v11  ;;  %v965_v20 = vsub.f32 %v237_v2, %v251_v12  ;;  %v967_v21 = vsub.f32 %v238_v3, %v255_v13  ;;  %v969_v22 = vsub.f32 %v239_v5, %v259_v14  ;;  %p1102_p3 = scmp.ne.s32.totalorder %s1092_s24, 0  ;;  %s799_s28 = smov [#allocation9]  }
  0x61   : > { %v971_v23 = vsub.f32 %v240_v6, %v263_v15  ;;  %v973_v24 = vsub.f32 %v241_v7, %v267_v17  ;;  %v979_v27 = vsub.f32 %v242_v9, %v271_v16  ;;  %v981_v28 = vsub.f32 %v243_v10, %v275_v18  ;;  %s708_s29 = sshll.u32 %s799_s28, 4  ;;  %s709_s29 = int_to_ptr.vmem [resolvable:$false] %s708_s29 }
  0x62   : > { %v284_v25 = vadd.f32 %v967_v21, %v963_v19  ;;  %v287_v26 = vadd.f32 %v969_v22, %v965_v20  ;;  %v343_v7 = vstv %s341_s21  ;;  %v356_v8 = vstv %s533_s30  ;;  %p706_p8 = pnand %p705_p7, %p1102_p3  ;;  %s710_s21 = scalar_lea.vmem %s709_s29, 3584 }
  0x63   : > { %v369_v9 = vstv %s537_s7  ;;  %v382_v10 = vstv %s541_s8  ;;  %v348_v12 = vstv %s995_s6  ;;  %v361_v13 = vstv %s997_s4  ;;  %p711_p12 = scmp.lt.s32.totalorder %s1022_s27, %s709_s29  ;;  %p712_p13 = scmp.lt.s32.totalorder %s710_s21, %s704_s1 }
  0x64   : > { %v285_v29 = vadd.f32 %v284_v25, %v971_v23  ;;  %v288_v30 = vadd.f32 %v287_v26, %v973_v24  ;;  %v374_v14 = vstv %s999_s5  ;;  %p707_p9 = pneg %p706_p8 }
  0x65   : > { %v387_v15 = vstv %s1001_s10  ;;  %p713_p2 = por %p712_p13, %p711_p12 }
  0x66   : > { %v286_v31 = vadd.f32 %v285_v29, %v979_v27  ;;  %v289_v32 = vadd.f32 %v288_v30, %v981_v28 }
  0x67   : > { %p714_p4 = pnand %p713_p2, %p707_p9 }
  0x68   : > { %v291_v33 = vmul.f32 0.25, %v286_v31  ;;  %v292_v34 = vmul.f32 0.25, %v289_v32 }
  0x6a   : > { %v293_v35 = vsub.f32 %v963_v19, %v291_v33  ;;  %v295_v36 = vsub.f32 %v967_v21, %v291_v33  ;;  %v297_v37 = vsub.f32 %v971_v23, %v291_v33  ;;  %v299_v38 = vsub.f32 %v979_v27, %v291_v33 }
  0x6b   : > { %v294_v39 = vsub.f32 %v965_v20, %v292_v34  ;;  %v296_v40 = vsub.f32 %v969_v22, %v292_v34  ;;  %v298_v41 = vsub.f32 %v973_v24, %v292_v34  ;;  %v300_v42 = vsub.f32 %v981_v28, %v292_v34 }
  0x6c   : > { %v301_v43 = vmul.f32 %v293_v35, %v293_v35  ;;  %v303_v44 = vmul.f32 %v295_v36, %v295_v36  ;;  %v305_v45 = vmul.f32 %v297_v37, %v297_v37  ;;  %v307_v49 = vmul.f32 %v299_v38, %v299_v38 }
  0x6d   : > { %v302_v46 = vmul.f32 %v294_v39, %v294_v39  ;;  %v304_v47 = vmul.f32 %v296_v40, %v296_v40  ;;  %v306_v48 = vmul.f32 %v298_v41, %v298_v41  ;;  %v308_v51 = vmul.f32 %v300_v42, %v300_v42 }
  0x6e   : > { %v309_v50 = vadd.f32 %v303_v44, %v301_v43 }
  0x6f   : > { %v312_v52 = vadd.f32 %v304_v47, %v302_v46 }
  0x70   : > { %v310_v53 = vadd.f32 %v309_v50, %v305_v45 }
  0x71   : > { %v313_v54 = vadd.f32 %v312_v52, %v306_v48 }
  0x72   : > { %v311_v55 = vadd.f32 %v310_v53, %v307_v49 }
  0x73   : > { %v314_v56 = vadd.f32 %v313_v54, %v308_v51 }
  0x74   : > { %v315_v57 = vmul.f32 0.25, %v311_v55 }
  0x75   : > { %v316_v58 = vmul.f32 0.25, %v314_v56 }
  0x76   : > { %638 = vrsqrt.f32 %v315_v57  ;;  %vm319_vm0 = vcmp.eq.f32.partialorder %v315_v57, inf  ;;  %v322_v60 = vand.u32 2147483648, %v315_v57  ;;  %vm321_vm1 = vcmp.eq.f32.partialorder %v315_v57, 0.0 }
  0x77   : > { %640 = vrsqrt.f32 %v316_v58  ;;  %vm326_vm2 = vcmp.eq.f32.partialorder %v316_v58, inf  ;;  %v329_v63 = vand.u32 2147483648, %v316_v58  ;;  %vm328_vm3 = vcmp.eq.f32.partialorder %v316_v58, 0.0 }
  0x83   : > { %v639_v59 = vpop.eup %638 }
  0x84   : > { %v641_v61 = vpop.eup %640  ;;  %v318_v62 = vmul.f32 %v639_v59, %v315_v57 }
  0x85   : > { %v325_v0 = vmul.f32 %v641_v61, %v316_v58 }
  0x86   : > { %v320_v1 = vsel %vm319_vm0, %v315_v57, %v318_v62 }
  0x87   : > { %v323_v2 = vsel %vm321_vm1, %v322_v60, %v320_v1  ;;  %v327_v3 = vsel %vm326_vm2, %v316_v58, %v325_v0 }
  0x88   : > { %v331_v4 = vadd.f32 1e-06, %v323_v2  ;;  %v330_v5 = vsel %vm328_vm3, %v329_v63, %v327_v3 }
  0x89   : > { %v332_v6 = vadd.f32 1e-06, %v330_v5 }
  0x8a   : > { %642 = vrcp.f32 %v331_v4 }
  0x8b   : > { %644 = vrcp.f32 %v332_v6 }
  0x97   : > { %v643_v11 = vpop.eup %642 }
  0x98   : > { %v645_v16 = vpop.eup %644  ;;  %v344_v17 = vmul.f32 %v643_v11, %v343_v7  ;;  %v357_v18 = vmul.f32 %v643_v11, %v356_v8  ;;  %v370_v25 = vmul.f32 %v643_v11, %v369_v9  ;;  %v383_v26 = vmul.f32 %v643_v11, %v382_v10 }
  0x99   : > { %v345_v29 = vmul.f32 %v645_v16, %v343_v7  ;;  %v358_v30 = vmul.f32 %v645_v16, %v356_v8  ;;  %v371_v31 = vmul.f32 %v645_v16, %v369_v9  ;;  %v384_v32 = vmul.f32 %v645_v16, %v382_v10 }
  0x9a   : > { %v346_v33 = vmul.f32 %v344_v17, %v963_v19  ;;  %v359_v34 = vmul.f32 %v357_v18, %v967_v21  ;;  %v372_v35 = vmul.f32 %v370_v25, %v971_v23  ;;  %v385_v36 = vmul.f32 %v383_v26, %v979_v27 }
  0x9b   : > { %v347_v37 = vmul.f32 %v345_v29, %v965_v20  ;;  %v360_v38 = vmul.f32 %v358_v30, %v969_v22  ;;  %v373_v39 = vmul.f32 %v371_v31, %v973_v24  ;;  %v386_v40 = vmul.f32 %v384_v32, %v981_v28 }
  0x9c   : > { %v349_v19 = vadd.f32 %v348_v12, %v346_v33  ;;  %v362_v21 = vadd.f32 %v361_v13, %v359_v34  ;;  %v375_v23 = vadd.f32 %v374_v14, %v372_v35  ;;  %v388_v27 = vadd.f32 %v387_v15, %v385_v36 }
  0x9d   : > { %v350_v20 = vadd.f32 %v348_v12, %v347_v37  ;;  %v363_v22 = vadd.f32 %v361_v13, %v360_v38  ;;  %v376_v24 = vadd.f32 %v374_v14, %v373_v39  ;;  %v389_v28 = vadd.f32 %v387_v15, %v386_v40 }
  0x9e   : > { %531 = vst [vmem:[%s955_s23 + $0x30] sm:$0xff] %v349_v19  ;;  %535 = vst [vmem:[%s955_s23 + $0x40] sm:$0xff] %v362_v21 }
  0x9f   : > { %539 = vst [vmem:[%s955_s23 + $0x50] sm:$0xff] %v375_v23  ;;  %543 = vst [vmem:[%s955_s23 + $0x60] sm:$0xff] %v388_v27 }
  0xa0   : > { %532 = vst [vmem:[%s955_s23 + $0x38] sm:$0xff] %v350_v20  ;;  %536 = vst [vmem:[%s955_s23 + $0x48] sm:$0xff] %v363_v22 }
  0xa1   : > { %540 = vst [vmem:[%s955_s23 + $0x58] sm:$0xff] %v376_v24  ;;  %544 = vst [vmem:[%s955_s23 + $0x68] sm:$0xff] %v389_v28 }
  0xa2   : > { %717 = shalt.err (!%p714_p4)
}
  0xa3   : > { %s718_s23 = scalar_lea.hbm %s1020_s20, 1792  ;;  %s722_s4 = scalar_lea.hbm %s1081_s3, 3584 }
  0xa4   : > { %p719_p10 = scmp.ne.s32.totalorder %s1020_s20, %s718_s23  ;;  %p723_p1 = scmp.lt.s32.totalorder %s1020_s20, %s1081_s3 }
  0xa5   : > { %p724_p6 = scmp.lt.s32.totalorder %s722_s4, %s718_s23 }
  0xa6   : > { %p720_p5 = pnand %p719_p10, %p1102_p3 }
  0xa7   : > { %p725_p11 = por %p724_p6, %p723_p1 }
  0xa8   : > { %p721_p0 = pneg %p720_p5 }
  0xaa   : > { %p726_p7 = pnand %p725_p11, %p721_p0 }
  0xac   : > { %729 = shalt.err (!%p726_p7)
}
  0xad   : > { %s800_s5 = smov 256   ;;  %s801_s10 = smov 16  }
  0xae   : > { %561 = dma.vmem_to_hbm [thread:$0]  (%p1102_p3), %s1022_s27, 1792, %s1020_s20, %s394_s26, %s800_s5, %s800_s5, %s801_s10  }
  0xaf PF: > { %s424_s11 = sand.u32 1, %s772_s12   ;;  %p1103_p8 = scmp.ne.s32.totalorder %s1093_s25, 0 }
  0xb0   : > { %p1104_p9 = scmp.ge.s32.totalorder %s792_s17, 2  ;;  %s425_s15 = scalar_lea.sflag [#allocation4], %s424_s11 }
  0xb2   : > { %p575_p12 = pnand %p1104_p9, %p1103_p8 }
  0xb4   : > { %p576_p13 = pneg %p575_p12 }
  0xb6   : > { %767 = dma.done.wait (%p576_p13), %s425_s15, 1792  }
  0xb7   : > { %769 = vsyncadd (%p576_p13), %s425_s15, 4294965504  ;;  %s21_s17 = sadd.s32 1, %s792_s17   ;;  %s1105_s12 = smov %s776_s13 }
  0xb8   : > { %p18_p2 = scmp.ge.s32.totalorder %s21_s17, 4   ;;  %s1106_s13 = smov %s780_s14 }
  0xb9   : > { %s1107_s14 = smov %s929_s9  ;;  %s1108_s15 = smov %s788_s16 }
  0xba   : > { %s1109_s16 = smov %s1111_s18  ;;  %20 = sbr.rel (!%p18_p2) target bundleno = 10 (0xa), region = 90 }
  0xbf   :  { %430 = vsyncpa [#allocation3], 1 }
  0xc0   :  { %432 = vsyncpa [#allocation3 + $0x1], 1 }
  0xc1   :  { %433 = vsyncpa [#allocation4], 1 }
  0xc2   :  { %435 = vsyncpa [#allocation4 + $0x1], 1 }
  0xc3   :  { %436 = vsyncpa [#allocation5], 1 }
  0xc4   :  { %438 = vsyncpa [#allocation5 + $0x1], 1 }
  0xc5   :  { %439 = vsyncpa [#allocation8], 1 }

</bundles_post_ra>
